<compile_context>
chip_gen: v7x
topology: tpu7x:2x2x1
jax: 0.10.0
libtpu: 0.0.40
codegen_flags: <defaults>
</compile_context>

<pallas_src>
import functools

import jax
import jax.numpy as jnp
from jax import lax
from jax.experimental import pallas as pl
from jax.experimental.pallas import tpu as pltpu


def _round_up(x, m):
    return ((x + m - 1) // m) * m


def _aligner_kernel(mixed_ref, wcat_ref, bcat_ref, wbil_ref, out_ref,
                    h2_ref, tmp_ref, *, bb, T, H, tq, ta, offset):
    """One (batch_block, q_tile, a_tile) block of pointer scores.

    mixed_ref : (bb, T_pad, D)  ScalarMix output (matmul dtype); resident
                across all (q, a) tiles of a batch block.
    wcat_ref  : (D, 2H)  fused [w_src | w_tgt]
    bcat_ref  : (1, 2H)  fused bias (f32)
    wbil_ref  : (H, H)   bilinear weight
    out_ref   : (bb, tq, ta) f32 score tile (rows = module's 'b', cols = 'a')
    h2_ref    : (bb, T_pad, H) scratch: tgt projection (score rows)
    tmp_ref   : (bb, T_pad, H) scratch: src projection @ W_bil (score cols)
    """
    q = pl.program_id(1)
    a = pl.program_id(2)

    # ---- once per batch block: fused projection + LeakyReLU + h1 @ W_bil ----
    @pl.when(jnp.logical_and(q == 0, a == 0))
    def _():
        for i in range(bb):   # bb is small; plain 2-D dots keep lowering simple
            proj = jnp.dot(mixed_ref[i], wcat_ref[...],
                           preferred_element_type=jnp.float32)     # (T_pad, 2H)
            proj = proj + bcat_ref[...]
            proj = jnp.where(proj > 0, proj, 0.01 * proj)           # LeakyReLU(0.01)
            h1 = proj[:, :H]                                        # src side
            h2 = proj[:, H:]                                        # tgt side
            tmp = jnp.dot(h1.astype(wbil_ref.dtype), wbil_ref[...],
                          preferred_element_type=jnp.float32)       # (T_pad, H)
            h2_ref[i] = h2.astype(h2_ref.dtype)
            tmp_ref[i] = tmp.astype(tmp_ref.dtype)

    # ---- per score tile ----
    q0 = pl.multiple_of(q * tq, tq)      # row offset (module's 'b' index)
    a0 = pl.multiple_of(a * ta, ta)      # col offset (module's 'a' index)

    # Tile entirely above the kept lower triangle -> skip both MXU matmuls.
    fully_masked = a0 > (q0 + tq - 1 + offset)

    @pl.when(fully_masked)
    def _():
        out_ref[...] = jnp.full(out_ref.shape, -jnp.inf, out_ref.dtype)

    @pl.when(jnp.logical_not(fully_masked))
    def _():
        h2_t = h2_ref[:, pl.ds(q0, tq), :]            # (bb, tq, H)
        tmp_t = tmp_ref[:, pl.ds(a0, ta), :]          # (bb, ta, H)
        # NT contraction over the last dim of both operands (flash-attention
        # pattern): no explicit transpose / XLU relayout.
        s = jnp.einsum('bqh,bah->bqa', h2_t, tmp_t,
                       preferred_element_type=jnp.float32)          # (bb, tq, ta)
        rows = q0 + lax.broadcasted_iota(jnp.int32, (tq, ta), 0)
        cols = a0 + lax.broadcasted_iota(jnp.int32, (tq, ta), 1)
        # tril(offset) mask plus masking of the padded region so the padded
        # output never contains finite garbage.
        keep = (cols <= rows + offset) & (rows < T) & (cols < T)
        out_ref[...] = jnp.where(keep[None], s, -jnp.inf).astype(out_ref.dtype)


def bilinear_aligner(dec_hidden, scalar_params, gamma, w_src, b_src, w_tgt,
                     b_tgt, w_bil, *, offset=-1, batch_block=1, score_tile=128,
                     matmul_dtype=jnp.bfloat16):
    """dec_hidden: (L, B, T, D) -> pointer scores (B, T, T) f32.

    Mirrors BilinearAligner.forward on the training path (is_generating=False).
    """
    L, B, T, D = dec_hidden.shape
    H = w_src.shape[1]
    assert B % batch_block == 0, "batch_block must divide batch"

    # ---- ScalarMix (gamma * sum_l softmax(s)_l * h_l) in the XLA wrapper.
    # Keeping it out of the kernel removes L from the resident VMEM block.
    mix_w = jax.nn.softmax(scalar_params.astype(jnp.float32)) * gamma
    mixed = jnp.einsum('l,lbtd->btd', mix_w, dec_hidden.astype(jnp.float32))

    # Lane-dense sequence padding, fused with the matmul-dtype downcast (the
    # one padded copy is of the L-x-smaller mixed tensor at half the bytes).
    T_pad = _round_up(T, 128)
    tile = min(score_tile, T_pad)
    assert T_pad % tile == 0
    mixed = jnp.pad(mixed.astype(matmul_dtype),
                    ((0, 0), (0, T_pad - T), (0, 0)))                # (B, T_pad, D)

    # Fused src/tgt projection; W_bil used directly as (H, H).
    w_cat = jnp.concatenate([w_src, w_tgt], axis=1).astype(matmul_dtype)   # (D, 2H)
    b_cat = jnp.concatenate([b_src, b_tgt]).reshape(1, 2 * H).astype(jnp.float32)
    w_bil_m = w_bil.astype(matmul_dtype)                                   # (H, H)

    nb, nq, na = B // batch_block, T_pad // tile, T_pad // tile
    elt = jnp.dtype(matmul_dtype).itemsize

    kernel = functools.partial(_aligner_kernel, bb=batch_block, T=T, H=H,
                               tq=tile, ta=tile, offset=offset)

    grid_spec = pltpu.PrefetchScalarGridSpec(
        num_scalar_prefetch=0,
        grid=(nb, nq, na),
        in_specs=[
            # mixed hidden: constant block index across (q, a) -> fetched once
            # per batch block and kept resident while its score tiles run.
            pl.BlockSpec((batch_block, T_pad, D), lambda b, q, a: (b, 0, 0)),
            # weights: constant block index -> fetched once.
            pl.BlockSpec((D, 2 * H), lambda b, q, a: (0, 0)),
            pl.BlockSpec((1, 2 * H), lambda b, q, a: (0, 0)),
            pl.BlockSpec((H, H), lambda b, q, a: (0, 0)),
        ],
        out_specs=pl.BlockSpec((batch_block, tile, tile),
                               lambda b, q, a: (b, q, a)),
        scratch_shapes=[
            pltpu.VMEM((batch_block, T_pad, H), matmul_dtype),   # h2 (tgt proj)
            pltpu.VMEM((batch_block, T_pad, H), matmul_dtype),   # h1 @ W_bil
        ],
    )

    # Explicit VMEM budget: 2x mixed block + 2x out block + 2x weights +
    # scratch + projection temporaries.  Re-derive batch_block / tile so this
    # stays under 64 MiB on v7x (half of v5e/v6e).
    vmem_need = (2 * batch_block * T_pad * D * elt
                 + 2 * batch_block * tile * tile * 4
                 + 2 * (D * 2 * H * elt + 2 * H * 4 + H * H * elt)
                 + 2 * batch_block * T_pad * H * elt
                 + 2 * batch_block * T_pad * 2 * H * 4)
    vmem_limit = int(min(max(2 * vmem_need, 32 * 1024 * 1024), 64 * 1024 * 1024))

    cost = pl.CostEstimate(
        flops=int(2 * B * T_pad * D * 2 * H          # fused projection
                  + 2 * B * T_pad * H * H            # h1 @ W_bil
                  + B * T_pad * T_pad * H),          # score tiles (~half skipped)
        transcendentals=0,
        bytes_accessed=int(elt * B * T_pad * D
                           + elt * (D * 2 * H + H * H) + 4 * 2 * H
                           + 4 * B * T_pad * T_pad),
    )

    out = pl.pallas_call(
        kernel,
        out_shape=jax.ShapeDtypeStruct((B, T_pad, T_pad), jnp.float32),
        grid_spec=grid_spec,
        compiler_params=pltpu.CompilerParams(
            # Batch axis "parallel": keep B // batch_block >= 2 on v7x so both
            # TensorCores get work.  q/a stay "arbitrary" because the per-batch
            # projection scratch is filled at the (q, a) == (0, 0) step.
            dimension_semantics=("parallel", "arbitrary", "arbitrary"),
            vmem_limit_bytes=vmem_limit),
        cost_estimate=cost,
    )(mixed, w_cat, b_cat, w_bil_m)

    # Padded rows/cols are already -inf in-kernel; slice restores (B, T, T).
    return out[:, :T, :T]


def bilinear_aligner_ref(dec_hidden, scalar_params, gamma, w_src, b_src,
                         w_tgt, b_tgt, w_bil, *, offset=-1):
    """Pure-JAX reference mirroring the PyTorch BilinearAligner.forward."""
    mix_w = jax.nn.softmax(scalar_params) * gamma
    mixed = jnp.einsum('l,lbtd->btd', mix_w, dec_hidden)
    lrelu = lambda x: jnp.where(x > 0, x, 0.01 * x)
    h1 = lrelu(mixed @ w_src + b_src)
    h2 = lrelu(mixed @ w_tgt + b_tgt)
    aligned = jnp.einsum('qax,xy,qby->qba', h1, w_bil, h2)
    T = aligned.shape[-1]
    keep = (jnp.arange(T)[:, None] + offset) >= jnp.arange(T)[None, :]
    return jnp.where(keep, aligned, -jnp.inf)


if __name__ == "__main__":
    # Small shapes implied by the module: bart_layers=3, batch=2, seq=8,
    # d_model(input_size)=32, aligner hidden_size=16, var_format -> offset=-1.
    L, B, T, D, H = 3, 2, 8, 32, 16
    key = jax.random.PRNGKey(0)
    ks = jax.random.split(key, 8)

    dec_hidden = jax.random.normal(ks[0], (L, B, T, D), dtype=jnp.float32)

    # Deterministic synthetic parameters (not a checkpoint load).
    scalar_params = jax.random.normal(ks[1], (L,), jnp.float32) * 0.1
    gamma = jnp.float32(1.0)
    w_src = jax.random.normal(ks[2], (D, H), jnp.float32) * 0.1
    b_src = jax.random.normal(ks[3], (H,), jnp.float32) * 0.1
    w_tgt = jax.random.normal(ks[4], (D, H), jnp.float32) * 0.1
    b_tgt = jax.random.normal(ks[5], (H,), jnp.float32) * 0.1
    # nn.Parameter(torch.zeros(H, H)) in the module; nonzero values here so the
    # bilinear path is actually exercised.
    w_bil = jax.random.normal(ks[6], (H, H), jnp.float32) * 0.1
    params = (scalar_params, gamma, w_src, b_src, w_tgt, b_tgt, w_bil)

    def check(out, ref, atol, rtol):
        assert out.shape == ref.shape, (out.shape, ref.shape)
        finite = jnp.isfinite(ref)
        assert bool(jnp.all(jnp.isfinite(out) == finite))
        assert bool(jnp.allclose(jnp.where(finite, out, 0.0),
                                 jnp.where(finite, ref, 0.0),
                                 atol=atol, rtol=rtol))

    # 1) Default bf16 MXU operands / f32 accumulation, 2 parallel batch steps.
    ref = bilinear_aligner_ref(dec_hidden, *params, offset=-1)
    out = jax.block_until_ready(
        bilinear_aligner(dec_hidden, *params, offset=-1, batch_block=1))
    check(out, ref, 5e-2, 5e-2)

    # 2) f32 operand path with the batch folded into the projection M dim
    #    (single-TC v5e/v6e style; on v7x keep B // batch_block >= 2).
    out32 = jax.block_until_ready(
        bilinear_aligner(dec_hidden, *params, offset=-1, batch_block=2,
                         matmul_dtype=jnp.float32))
    check(out32, ref, 1e-4, 1e-4)

    # 3) offset=0 ('target-side-pointer2' var_format).
    ref0 = bilinear_aligner_ref(dec_hidden, *params, offset=0)
    out0 = jax.block_until_ready(
        bilinear_aligner(dec_hidden, *params, offset=0, batch_block=1,
                         matmul_dtype=jnp.float32))
    check(out0, ref0, 1e-4, 1e-4)

    # 4) Multi-tile sequence (T > 128): exercises fully-masked tile skipping
    #    and the in-kernel masking of the padded region.
    T_big = 200
    dec_big = jax.random.normal(ks[7], (L, B, T_big, D), dtype=jnp.float32)
    ref_big = bilinear_aligner_ref(dec_big, *params, offset=-1)
    out_big = jax.block_until_ready(
        bilinear_aligner(dec_big, *params, offset=-1, batch_block=1,
                         matmul_dtype=jnp.float32))
    check(out_big, ref_big, 1e-4, 1e-4)

    print("KERNEL_OK")
</pallas_src>

<mosaic_0001>
module attributes {stable_mosaic.version = 11 : i64} {
  func.func @_aligner_kernel(%arg0: i32, %arg1: i32, %arg2: i32, %arg3: memref<1x128x32xbf16, #tpu.memory_space<vmem>>, %arg4: memref<32x32xbf16, #tpu.memory_space<vmem>>, %arg5: memref<1x32xf32, #tpu.memory_space<vmem>>, %arg6: memref<16x16xbf16, #tpu.memory_space<vmem>>, %arg7: memref<1x128x128xf32, #tpu.memory_space<vmem>>, %arg8: memref<1x128x16xbf16, #tpu.memory_space<vmem>>, %arg9: memref<1x128x16xbf16, #tpu.memory_space<vmem>>) attributes {dimension_semantics = [#tpu.dimension_semantics<parallel>, #tpu.dimension_semantics<arbitrary>, #tpu.dimension_semantics<arbitrary>], iteration_bounds = array<i64: 2, 1, 1>, scalar_prefetch = 0 : i64, scratch_operands = 2 : i64, tpu.core_type = #tpu.core_type<tc>, window_params = [{transform_indices = @transform_0, window_bounds = array<i64: 1, 128, 32>}, {pipeline_mode = #tpu.pipeline_mode<synchronous>, transform_indices = @transform_1, window_bounds = array<i64: 32, 32>}, {pipeline_mode = #tpu.pipeline_mode<synchronous>, transform_indices = @transform_2, window_bounds = array<i64: 1, 32>}, {pipeline_mode = #tpu.pipeline_mode<synchronous>, transform_indices = @transform_3, window_bounds = array<i64: 16, 16>}, {transform_indices = @transform_4, window_bounds = array<i64: 1, 128, 128>}]} {
    %c0_i32 = arith.constant 0 : i32
    %0 = arith.cmpi eq, %arg1, %c0_i32 : i32
    %c0_i32_0 = arith.constant 0 : i32
    %1 = arith.cmpi eq, %arg2, %c0_i32_0 : i32
    %2 = arith.andi %0, %1 : i1
    %3 = arith.extui %2 : i1 to i32
    %c0_i32_1 = arith.constant 0 : i32
    %4 = arith.cmpi ne, %3, %c0_i32_1 : i32
    scf.if %4 {
      %c0 = arith.constant 0 : index
      %c0_6 = arith.constant 0 : index
      %c0_7 = arith.constant 0 : index
      %18 = vector.load %arg3[%c0, %c0_6, %c0_7] : memref<1x128x32xbf16, #tpu.memory_space<vmem>>, vector<1x128x32xbf16>
      %19 = vector.shape_cast %18 : vector<1x128x32xbf16> to vector<128x32xbf16>
      %c0_8 = arith.constant 0 : index
      %c0_9 = arith.constant 0 : index
      %20 = vector.load %arg4[%c0_8, %c0_9] : memref<32x32xbf16, #tpu.memory_space<vmem>>, vector<32x32xbf16>
      %cst = arith.constant dense<0.000000e+00> : vector<128x32xf32>
      %21 = tpu.matmul %19, %20, %cst {dimension_numbers = #tpu.dot_dimension_numbers<[1], [0], [0], [1], [0, 0, 1, 1], [], []>} : vector<128x32xbf16>, vector<32x32xbf16>, vector<128x32xf32> -> vector<128x32xf32>
      %c0_10 = arith.constant 0 : index
      %c0_11 = arith.constant 0 : index
      %22 = vector.load %arg5[%c0_10, %c0_11] : memref<1x32xf32, #tpu.memory_space<vmem>>, vector<1x32xf32>
      %23 = vector.broadcast %22 : vector<1x32xf32> to vector<128x32xf32>
      %24 = arith.addf %21, %23 : vector<128x32xf32>
      %cst_12 = arith.constant 0.000000e+00 : f32
      %25 = vector.broadcast %cst_12 : f32 to vector<128x32xf32>
      %26 = arith.cmpf ogt, %24, %25 : vector<128x32xf32>
      %cst_13 = arith.constant 0.00999999977 : f32
      %27 = vector.broadcast %cst_13 : f32 to vector<128x32xf32>
      %28 = arith.mulf %27, %24 : vector<128x32xf32>
      %29 = arith.select %26, %24, %28 : vector<128x32xi1>, vector<128x32xf32>
      %30 = vector.extract_strided_slice %29 {offsets = [0, 0], sizes = [128, 16], strides = [1, 1]} : vector<128x32xf32> to vector<128x16xf32>
      %31 = vector.extract_strided_slice %29 {offsets = [0, 16], sizes = [128, 16], strides = [1, 1]} : vector<128x32xf32> to vector<128x16xf32>
      %32 = arith.truncf %30 : vector<128x16xf32> to vector<128x16xbf16>
      %c0_14 = arith.constant 0 : index
      %c0_15 = arith.constant 0 : index
      %33 = vector.load %arg6[%c0_14, %c0_15] : memref<16x16xbf16, #tpu.memory_space<vmem>>, vector<16x16xbf16>
      %cst_16 = arith.constant dense<0.000000e+00> : vector<128x16xf32>
      %34 = tpu.matmul %32, %33, %cst_16 {dimension_numbers = #tpu.dot_dimension_numbers<[1], [0], [0], [1], [0, 0, 1, 1], [], []>} : vector<128x16xbf16>, vector<16x16xbf16>, vector<128x16xf32> -> vector<128x16xf32>
      %35 = arith.truncf %31 : vector<128x16xf32> to vector<128x16xbf16>
      %c0_17 = arith.constant 0 : index
      %c0_18 = arith.constant 0 : index
      %c0_19 = arith.constant 0 : index
      %36 = vector.load %arg8[%c0_17, %c0_18, %c0_19] : memref<1x128x16xbf16, #tpu.memory_space<vmem>>, vector<1x128x16xbf16>
      %37 = vector.shape_cast %36 : vector<1x128x16xbf16> to vector<128x16xbf16>
      %38 = vector.shape_cast %35 : vector<128x16xbf16> to vector<1x128x16xbf16>
      tpu.vector_store %arg8[%c0_17, %c0_18, %c0_19], %38 {strides = array<i32>} : memref<1x128x16xbf16, #tpu.memory_space<vmem>>, vector<1x128x16xbf16>,
      %39 = arith.truncf %34 : vector<128x16xf32> to vector<128x16xbf16>
      %c0_20 = arith.constant 0 : index
      %c0_21 = arith.constant 0 : index
      %c0_22 = arith.constant 0 : index
      %40 = vector.load %arg9[%c0_20, %c0_21, %c0_22] : memref<1x128x16xbf16, #tpu.memory_space<vmem>>, vector<1x128x16xbf16>
      %41 = vector.shape_cast %40 : vector<1x128x16xbf16> to vector<128x16xbf16>
      %42 = vector.shape_cast %39 : vector<128x16xbf16> to vector<1x128x16xbf16>
      tpu.vector_store %arg9[%c0_20, %c0_21, %c0_22], %42 {strides = array<i32>} : memref<1x128x16xbf16, #tpu.memory_space<vmem>>, vector<1x128x16xbf16>,
    } else {
    }
    %c128_i32 = arith.constant 128 : i32
    %5 = arith.muli %arg1, %c128_i32 : i32
    %6 = tpu.assume_multiple %5, 128 : i32
    %c128_i32_2 = arith.constant 128 : i32
    %7 = arith.muli %arg2, %c128_i32_2 : i32
    %8 = tpu.assume_multiple %7, 128 : i32
    %c128_i32_3 = arith.constant 128 : i32
    %9 = arith.addi %6, %c128_i32_3 : i32
    %c1_i32 = arith.constant 1 : i32
    %10 = arith.subi %9, %c1_i32 : i32
    %c-1_i32 = arith.constant -1 : i32
    %11 = arith.addi %10, %c-1_i32 : i32
    %12 = arith.cmpi sgt, %8, %11 : i32
    %13 = arith.extui %12 : i1 to i32
    %c0_i32_4 = arith.constant 0 : i32
    %14 = arith.cmpi ne, %13, %c0_i32_4 : i32
    scf.if %14 {
      %cst = arith.constant 0xFF800000 : f32
      %18 = vector.broadcast %cst : f32 to vector<1x128x128xf32>
      %c0 = arith.constant 0 : index
      %c0_6 = arith.constant 0 : index
      %c0_7 = arith.constant 0 : index
      %19 = vector.load %arg7[%c0, %c0_6, %c0_7] : memref<1x128x128xf32, #tpu.memory_space<vmem>>, vector<1x128x128xf32>
      tpu.vector_store %arg7[%c0, %c0_6, %c0_7], %18 {strides = array<i32>} : memref<1x128x128xf32, #tpu.memory_space<vmem>>, vector<1x128x128xf32>,
    } else {
    }
    %true = arith.constant true
    %15 = arith.xori %12, %true : i1
    %16 = arith.extui %15 : i1 to i32
    %c0_i32_5 = arith.constant 0 : i32
    %17 = arith.cmpi ne, %16, %c0_i32_5 : i32
    scf.if %17 {
      %c0 = arith.constant 0 : index
      %18 = arith.index_cast %6 : i32 to index
      %c0_6 = arith.constant 0 : index
      %19 = vector.load %arg8[%c0, %18, %c0_6] : memref<1x128x16xbf16, #tpu.memory_space<vmem>>, vector<1x128x16xbf16>
      %c0_7 = arith.constant 0 : index
      %20 = arith.index_cast %8 : i32 to index
      %c0_8 = arith.constant 0 : index
      %21 = vector.load %arg9[%c0_7, %20, %c0_8] : memref<1x128x16xbf16, #tpu.memory_space<vmem>>, vector<1x128x16xbf16>
      "tpu.trace_start"() <{level = 10 : i32, message = "bqh,bah->bqa"}> : () -> ()
      %cst = arith.constant dense<0.000000e+00> : vector<1x128x128xf32>
      %22 = tpu.matmul %19, %21, %cst {dimension_numbers = #tpu.dot_dimension_numbers<[2], [2], [1], [1], [0, 0, 0, 1, 1, 1], [0], [0]>} : vector<1x128x16xbf16>, vector<1x128x16xbf16>, vector<1x128x128xf32> -> vector<1x128x128xf32>
      "tpu.trace_stop"() : () -> ()
      %23 = tpu.iota {dimensions = array<i32: 0>} : vector<128x128xi32>
      %24 = vector.broadcast %6 : i32 to vector<128x128xi32>
      %25 = arith.addi %24, %23 : vector<128x128xi32>
      %26 = tpu.iota {dimensions = array<i32: 1>} : vector<128x128xi32>
      %27 = vector.broadcast %8 : i32 to vector<128x128xi32>
      %28 = arith.addi %27, %26 : vector<128x128xi32>
      %c-1_i32_9 = arith.constant -1 : i32
      %29 = vector.broadcast %c-1_i32_9 : i32 to vector<128x128xi32>
      %30 = arith.addi %25, %29 : vector<128x128xi32>
      %31 = arith.cmpi sle, %28, %30 : vector<128x128xi32>
      %c8_i32 = arith.constant 8 : i32
      %32 = vector.broadcast %c8_i32 : i32 to vector<128x128xi32>
      %33 = arith.cmpi slt, %25, %32 : vector<128x128xi32>
      %34 = arith.andi %31, %33 : vector<128x128xi1>
      %c8_i32_10 = arith.constant 8 : i32
      %35 = vector.broadcast %c8_i32_10 : i32 to vector<128x128xi32>
      %36 = arith.cmpi slt, %28, %35 : vector<128x128xi32>
      %37 = arith.andi %34, %36 : vector<128x128xi1>
      %38 = vector.shape_cast %37 : vector<128x128xi1> to vector<1x128x128xi1>
      %cst_11 = arith.constant 0xFF800000 : f32
      %39 = vector.broadcast %cst_11 : f32 to vector<1x128x128xf32>
      %40 = arith.select %38, %22, %39 : vector<1x128x128xi1>, vector<1x128x128xf32>
      %c0_12 = arith.constant 0 : index
      %c0_13 = arith.constant 0 : index
      %c0_14 = arith.constant 0 : index
      %41 = vector.load %arg7[%c0_12, %c0_13, %c0_14] : memref<1x128x128xf32, #tpu.memory_space<vmem>>, vector<1x128x128xf32>
      tpu.vector_store %arg7[%c0_12, %c0_13, %c0_14], %40 {strides = array<i32>} : memref<1x128x128xf32, #tpu.memory_space<vmem>>, vector<1x128x128xf32>,
    } else {
    }
    return
  }
  func.func @transform_0(%arg0: i32, %arg1: i32, %arg2: i32) -> (i32, i32, i32) {
    %c0_i32 = arith.constant 0 : i32
    %c0_i32_0 = arith.constant 0 : i32
    %c0_i32_1 = arith.constant 0 : i32
    return %arg0, %c0_i32, %c0_i32_0 : i32, i32, i32
  }
  func.func @transform_1(%arg0: i32, %arg1: i32, %arg2: i32) -> (i32, i32) {
    %c0_i32 = arith.constant 0 : i32
    %c0_i32_0 = arith.constant 0 : i32
    %c0_i32_1 = arith.constant 0 : i32
    return %c0_i32, %c0_i32_0 : i32, i32
  }
  func.func @transform_2(%arg0: i32, %arg1: i32, %arg2: i32) -> (i32, i32) {
    %c0_i32 = arith.constant 0 : i32
    %c0_i32_0 = arith.constant 0 : i32
    %c0_i32_1 = arith.constant 0 : i32
    return %c0_i32, %c0_i32_0 : i32, i32
  }
  func.func @transform_3(%arg0: i32, %arg1: i32, %arg2: i32) -> (i32, i32) {
    %c0_i32 = arith.constant 0 : i32
    %c0_i32_0 = arith.constant 0 : i32
    %c0_i32_1 = arith.constant 0 : i32
    return %c0_i32, %c0_i32_0 : i32, i32
  }
  func.func @transform_4(%arg0: i32, %arg1: i32, %arg2: i32) -> (i32, i32, i32) {
    %c0_i32 = arith.constant 0 : i32
    return %arg0, %arg1, %arg2 : i32, i32, i32
  }
}

</mosaic_0001>

<bundles_post_ra>
// kernel: tpu_custom_call.1
= control target key start
LH: loop header
LB: loop body
LE: loop exit
PB: predicated region body
PF: predicated region fallthrough
CT: control target
= control target key end

     0   :  { %9 = vsyncpa [#allocation5], 0  ;;  %s1728_s0 = inlined_call_operand.vmem [shape: bf16[2,128,32], index: 0, kind: input, shape index: {}]   ;;  %s1729_s1 = inlined_call_operand.vmem [shape: bf16[32,32], index: 1, kind: input, shape index: {}]   ;;  %s1730_s2 = inlined_call_operand.vmem [shape: f32[1,32], index: 2, kind: input, shape index: {}]   ;;  %s1731_s3 = inlined_call_operand.vmem [shape: bf16[16,16], index: 3, kind: input, shape index: {}]   ;;  %s1732_s4 = inlined_call_operand.hbm [shape: f32[2,128,128], index: 4, kind: output, shape index: {}]  }
   0x1   :  { %11 = vsyncpa [#allocation5 + $0x1], 0  ;;  %s1484_s15 = smov 0   ;;  %s1486_s16 = smov 0  }
   0x2   :  { %s1488_s17 = smov 0   ;;  %s1490_s18 = smov 0  }
   0x3   :  { %s1492_s19 = smov 0   ;;  %s1494_s20 = smov 0  }
   0x4 LB: > { %s1116_s21 = sadd.s32 4294967295, %s1452_s20   ;;  %s1117_s22 = sadd.s32 4294967294, %s1452_s20   ;;  %s1452_s20 = sphi %s1494_s20, %s17_s20   ;;  %s1448_s19 = sphi %s1492_s19, %s1739_s19   ;;  %s1444_s18 = sphi %s1490_s18, %s1738_s18   ;;  %s1440_s17 = sphi %s1488_s17, %s1737_s17   ;;  %s1436_s16 = sphi %s1486_s16, %s1736_s16   ;;  %s1432_s15 = sphi %s1484_s15, %s1735_s15  }
   0x5   : > { %s36_s23 = sadd.s32 1, %s1448_s19  ;;  %s136_s24 = sadd.s32 1, %s1440_s17 }
   0x6   : > { %p38_p0 = scmp.ge.s32.totalorder %s36_s23, 2  ;;  %p146_p1 = scmp.ne.s32.totalorder %s1440_s17, %s1436_s16 }
   0x7   : > { %p147_p2 = scmp.eq.s32.totalorder %s1116_s21, 1  ;;  %p152_p3 = scmp.ne.s32.totalorder %s1436_s16, %s1432_s15 }
   0x8   : > { %s1741_s23 = smov (%p38_p0, %s36_s23), 0  ;;  %p153_p5 = scmp.eq.s32.totalorder %s1117_s22, 1 }
   0x9   : > { %p1524_p4 = por %p147_p2, %p146_p1  ;;  %s129_s26 = ssub.s32 %s1448_s19, %s1741_s23 }
   0xa   : > { %p1120_p6 = scmp.ge.s32.totalorder %s1452_s20, 1  ;;  %p134_p7 = scmp.eq.s32.totalorder %s129_s26, 0 }
   0xb   : > { %p1531_p8 = por %p153_p5, %p152_p3  ;;  %p188_p9 = scmp.lt.s32.totalorder %s1452_s20, 3 }
   0xc   : > { %s1537_s28 = scalar_select %p134_p7, %s1440_s17, %s136_s24  }
   0xd   : > { %p189_p10 = pnand %p1120_p6, %p188_p9 }
   0xe   : > { %v1363_v0 = vld [vmem:[%s1729_s1] sm:$0xff] (!%p189_p10)   ;;  %p214_p11 = scmp.lt.s32.totalorder (!%p189_p10), %s1444_s18, 1  ;;  %v1364_v1 = vld [vmem:[%s1729_s1 + $0x8] sm:$0xff] (!%p189_p10)   ;;  %vm306_vm0 = vcmask (!%p189_p10), 261120   ;;  %vm492_vm5 = vcmask (!%p189_p10), 130048   ;;  %s1454_s22 = smov (!%p189_p10), 112  }
   0xf   : > { %192 = sbr.rel (%p189_p10) target bundleno = 775 (0x307), region = 36  ;;  %1202 = vmatprep.subr.bf16.mxu0 (!%p189_p10), %v1363_v0  ;;  %v1373_v10 = vld [vmem:[%s1731_s3] sm:$0xff] (!%p189_p10)   ;;  %s211_s24 = sand.u32 (!%p189_p10), 1, %s1436_s16  }
  0x10   : > { %1203 = vmatpush3.bf16.msra.mxu0 (!%p189_p10), %v1363_v0  ;;  %1222 = vmatprep.subr.bf16.mxu1 (!%p189_p10), %v1373_v10  ;;  %v1564_v11 = vld [vmem:[%s1730_s2] ss:$0 sm:$0xff] (!%p189_p10)  ;;  %s1121_s26 = sshll.u32 (!%p189_p10), %s211_s24, 7  ;;  %s1166_s30 = sshll.u32 (!%p189_p10), %s1444_s18, 11 }
  0x11   : > { %1204 = vmatprep.subr.bf16.mxu0 (!%p189_p10), %v1364_v1  ;;  %1223 = vmatpush3.bf16.msra.mxu1 (!%p189_p10), %v1373_v10  ;;  %s1653_s29 = scalar_lea.vmem (!%p189_p10), [#allocation4], %s1121_s26  ;;  %s1456_s10 = smov (!%p189_p10), [#allocation4]  }
  0x12   : > { %s1035_s5 = sshll.u32 (!%p189_p10), %s1653_s29, 4  ;;  %s1677_s5 = int_to_ptr.vmem [resolvable:$true] %s1035_s5 }
  0x13   : > { %s1374_s9 = scalar_lea.vmem (!%p189_p10), %s1677_s5, 2048 }
  0x14   : > { %1205 = vmatpush3.bf16.msra.mxu0 (!%p189_p10), %v1364_v1  ;;  %p1375_p12 = scmp.ne.s32.totalorder (!%p189_p10), %s1677_s5, %s1374_s9 }
  0x16   : > { %s215_s7 = scalar_select %p214_p11, %s1444_s18, 1 }
  0x17   : > { %s1682_s18 = scalar_lea.sflag [#allocation5], %s211_s24  ;;  %p1376_p13 = pnand %p1375_p12, %p1524_p4 }
  0x18   : > { %s1165_s8 = sshll.u32 %s215_s7, 6 }
  0x19   : > { %s218_s11 = scalar_lea.vmem %s1728_s0, %s1165_s8  ;;  %s1675_s8 = scalar_lea.hbm %s1732_s4, %s1166_s30 }
  0x1a   : > { %v1365_v2 = vld [vmem:[%s218_s11] sm:$0xff]   ;;  %v1366_v3 = vld [vmem:[%s218_s11 + $0x8] sm:$0xff]   ;;  %v1367_v4 = vld [vmem:[%s218_s11 + $0x10] sm:$0xff]   ;;  %p1377_p0 = pneg %p1376_p13 }
  0x1b   : > { %1206 = vmatprep.mubr.msk.bf16.mxu0 %vm306_vm0, %v1365_v2  ;;  %v1368_v5 = vld [vmem:[%s218_s11 + $0x18] sm:$0xff]   ;;  %v1369_v6 = vld [vmem:[%s218_s11 + $0x20] sm:$0xff]   ;;  %v1370_v7 = vld [vmem:[%s218_s11 + $0x28] sm:$0xff]  }
  0x1c   : > { %1207 = vmatmul.mubr.msk.bf16.vlgmr.msra.gmra.mrb[0].mxu0 %vm306_vm0, %v1366_v3  ;;  %v1371_v8 = vld [vmem:[%s218_s11 + $0x30] sm:$0xff]   ;;  %v1372_v9 = vld [vmem:[%s218_s11 + $0x38] sm:$0xff]   ;;  %s1378_s11 = sshll.u32 %s1456_s10, 4  ;;  %s1379_s11 = int_to_ptr.vmem [resolvable:$false] %s1378_s11 }
  0x1d   : > { %1210 = vmatprep.mubr.msk.bf16.mxu0 %vm306_vm0, %v1367_v4  ;;  %s1380_s12 = scalar_lea.vmem %s1379_s11, 4096  ;;  %p1381_p1 = scmp.lt.s32.totalorder %s1677_s5, %s1379_s11 }
  0x1e   : > { %p1382_p2 = scmp.lt.s32.totalorder %s1380_s12, %s1374_s9 }
  0x20   : > { %p1383_p3 = por %p1382_p2, %p1381_p1 }
  0x22   : > { %p1384_p5 = pnand %p1383_p3, %p1377_p0 }
  0x24   : > { %1211 = vmatmul.mubr.msk.bf16.gmra.mrb[4].mxu0 %vm306_vm0, %v1368_v5 }
  0x25   : > { %1214 = vmatprep.mubr.msk.bf16.mxu0 %vm306_vm0, %v1369_v6 }
  0x2c   : > { %1215 = vmatmul.mubr.msk.bf16.gmra.mrb[8].mxu0 %vm306_vm0, %v1370_v7 }
  0x2d   : > { %1218 = vmatprep.mubr.msk.bf16.mxu0 %vm306_vm0, %v1371_v8 }
  0x34   : > { %1219 = vmatmul.mubr.msk.bf16.gmra.mrb[12].mxu0 %vm306_vm0, %v1372_v9 }
  0xef   : > { %v1208_v12 = vpop.f32.mrb[0].mxu0 }
  0xf0   : > { %v374_v13 = vadd.f32 %v1208_v12, %v1564_v11  ;;  %v365_v14 = vpop.f32.mrb[1].mxu0 }
  0xf1   : > { %v366_v15 = vadd.f32 %v1564_v11, %v365_v14  ;;  %v1209_v16 = vpop.f32.mrb[2].mxu0 }
  0xf2   : > { %v446_v17 = vmul.f32 0.01, %v374_v13  ;;  %v377_v18 = vadd.f32 %v1209_v16, %v1564_v11  ;;  %v368_v19 = vpop.f32.mrb[3].mxu0  ;;  %vm430_vm1 = vcmp.gt.f32.partialorder %v374_v13, 0.0 }
  0xf3   : > { %v444_v20 = vmul.f32 0.01, %v366_v15  ;;  %v369_v21 = vadd.f32 %v1564_v11, %v368_v19  ;;  %vm428_vm3 = vcmp.gt.f32.partialorder %v366_v15, 0.0 }
  0xf4   : > { %vm431_vm2 = vcmp.gt.f32.partialorder %v377_v18, 0.0  ;;  %v447_v22 = vmul.f32 0.01, %v377_v18  ;;  %v462_v24 = vsel %vm430_vm1, %v374_v13, %v446_v17 }
  0xf5   : > { %v445_v23 = vmul.f32 0.01, %v369_v21  ;;  %vm429_vm4 = vcmp.gt.f32.partialorder %v369_v21, 0.0  ;;  %v460_v28 = vsel %vm428_vm3, %v366_v15, %v444_v20 }
  0xf6   : > { %v463_v25 = vsel %vm431_vm2, %v377_v18, %v447_v22 }
  0xf7   : > { %v1570_v26 = vpack.c.bf16 %v463_v25, %v462_v24  ;;  %v1212_v27 = vpop.f32.mrb[4].mxu0  ;;  %v461_v29 = vsel %vm429_vm4, %v369_v21, %v445_v23 }
  0xf8   : > { %v390_v30 = vadd.f32 %v1212_v27, %v1564_v11  ;;  %v381_v31 = vpop.f32.mrb[5].mxu0  ;;  %v476_v32 = vpack.c.bf16 %v461_v29, %v460_v28 }
  0xf9   : > { %v382_v33 = vadd.f32 %v1564_v11, %v381_v31  ;;  %v1213_v34 = vpop.f32.mrb[6].mxu0 }
  0xfa   : > { %vm434_vm6 = vcmp.gt.f32.partialorder %v390_v30, 0.0  ;;  %v450_v35 = vmul.f32 0.01, %v390_v30  ;;  %v393_v36 = vadd.f32 %v1213_v34, %v1564_v11  ;;  %v384_v37 = vpop.f32.mrb[7].mxu0  ;;  %1224 = vmatprep.mubr.msk.bf16.mxu1 %vm492_vm5, %v476_v32 }
  0xfb   : > { %v448_v38 = vmul.f32 0.01, %v382_v33  ;;  %v385_v39 = vadd.f32 %v1564_v11, %v384_v37  ;;  %1225 = vmatmul.mubr.msk.bf16.vlgmr.msra.gmra.mrb[0].mxu1 %vm492_vm5, %v1570_v26  ;;  %vm432_vm7 = vcmp.gt.f32.partialorder %v382_v33, 0.0 }
  0xfc   : > { %v466_v40 = vsel %vm434_vm6, %v390_v30, %v450_v35  ;;  %vm435_vm8 = vcmp.gt.f32.partialorder %v393_v36, 0.0  ;;  %v451_v41 = vmul.f32 0.01, %v393_v36 }
  0xfd   : > { %v449_v42 = vmul.f32 0.01, %v385_v39  ;;  %vm433_vm9 = vcmp.gt.f32.partialorder %v385_v39, 0.0  ;;  %v464_v43 = vsel %vm432_vm7, %v382_v33, %v448_v38 }
  0xfe   : > { %v467_v44 = vsel %vm435_vm8, %v393_v36, %v451_v41 }
  0xff   : > { %v479_v45 = vpack.c.bf16 %v467_v44, %v466_v40  ;;  %v1216_v46 = vpop.f32.mrb[8].mxu0  ;;  %v465_v47 = vsel %vm433_vm9, %v385_v39, %v449_v42 }
 0x100   : > { %v406_v48 = vadd.f32 %v1216_v46, %v1564_v11  ;;  %v397_v49 = vpop.f32.mrb[9].mxu0  ;;  %v478_v50 = vpack.c.bf16 %v465_v47, %v464_v43 }
 0x101   : > { %v398_v51 = vadd.f32 %v1564_v11, %v397_v49  ;;  %v1217_v52 = vpop.f32.mrb[10].mxu0 }
 0x102   : > { %vm438_vm10 = vcmp.gt.f32.partialorder %v406_v48, 0.0  ;;  %v454_v53 = vmul.f32 0.01, %v406_v48  ;;  %v409_v54 = vadd.f32 %v1217_v52, %v1564_v11  ;;  %v400_v55 = vpop.f32.mrb[11].mxu0  ;;  %626 = vrot.lane.b32.xlu0 %v478_v50, %s1454_s22  ;;  %1228 = vmatprep.mubr.msk.bf16.mxu1 %vm492_vm5, %v478_v50 }
 0x103   : > { %v452_v56 = vmul.f32 0.01, %v398_v51  ;;  %v401_v57 = vadd.f32 %v1564_v11, %v400_v55  ;;  %1229 = vmatmul.mubr.msk.bf16.gmra.mrb[4].mxu1 %vm492_vm5, %v479_v45  ;;  %vm436_vm11 = vcmp.gt.f32.partialorder %v398_v51, 0.0 }
 0x104   : > { %vm439_vm12 = vcmp.gt.f32.partialorder %v409_v54, 0.0  ;;  %v455_v58 = vmul.f32 0.01, %v409_v54  ;;  %v470_v59 = vsel %vm438_vm10, %v406_v48, %v454_v53 }
 0x105   : > { %v453_v60 = vmul.f32 0.01, %v401_v57  ;;  %vm437_vm13 = vcmp.gt.f32.partialorder %v401_v57, 0.0  ;;  %v468_v61 = vsel %vm436_vm11, %v398_v51, %v452_v56 }
 0x106   : > { %628 = vrot.lane.b32.xlu0 %v479_v45, %s1454_s22  ;;  %v471_v62 = vsel %vm439_vm12, %v409_v54, %v455_v58 }
 0x107   : > { %v469_v63 = vsel %vm437_vm13, %v401_v57, %v453_v60  ;;  %v481_v0 = vpack.c.bf16 %v471_v62, %v470_v59  ;;  %v1220_v1 = vpop.f32.mrb[12].mxu0 }
 0x108   : > { %v480_v2 = vpack.c.bf16 %v469_v63, %v468_v61  ;;  %v422_v3 = vadd.f32 %v1220_v1, %v1564_v11  ;;  %v413_v4 = vpop.f32.mrb[13].mxu0 }
 0x109   : > { %v414_v5 = vadd.f32 %v1564_v11, %v413_v4  ;;  %v1221_v6 = vpop.f32.mrb[14].mxu0 }
 0x10a   : > { %630 = vrot.lane.b32.xlu1 %v480_v2, %s1454_s22  ;;  %622 = vrot.lane.b32.xlu0 %v476_v32, %s1454_s22  ;;  %vm442_vm14 = vcmp.gt.f32.partialorder %v422_v3, 0.0  ;;  %v458_v7 = vmul.f32 0.01, %v422_v3  ;;  %v425_v8 = vadd.f32 %v1221_v6, %v1564_v11  ;;  %v416_v9 = vpop.f32.mrb[15].mxu0 }
 0x10b   : > { %1232 = vmatprep.mubr.msk.bf16.mxu1 %vm492_vm5, %v480_v2  ;;  %vm440_vm15 = vcmp.gt.f32.partialorder %v414_v5, 0.0  ;;  %v456_v10 = vmul.f32 0.01, %v414_v5  ;;  %v417_v12 = vadd.f32 %v1564_v11, %v416_v9 }
 0x10c   : > { %1233 = vmatmul.mubr.msk.bf16.gmra.mrb[8].mxu1 %vm492_vm5, %v481_v0  ;;  %v474_v13 = vsel %vm442_vm14, %v422_v3, %v458_v7  ;;  %vm443_vm0 = vcmp.gt.f32.partialorder %v425_v8, 0.0  ;;  %v459_v14 = vmul.f32 0.01, %v425_v8 }
 0x10d   : > { %v472_v15 = vsel %vm440_vm15, %v414_v5, %v456_v10  ;;  %vm441_vm1 = vcmp.gt.f32.partialorder %v417_v12, 0.0  ;;  %v457_v16 = vmul.f32 0.01, %v417_v12 }
 0x10e   : > { %632 = vrot.lane.b32.xlu1 %v481_v0, %s1454_s22  ;;  %v475_v17 = vsel %vm443_vm0, %v425_v8, %v459_v14  ;;  %v867_v14 = vlaneseq }
 0x10f   : > { %v483_v18 = vpack.c.bf16 %v475_v17, %v474_v13  ;;  %v473_v19 = vsel %vm441_vm1, %v417_v12, %v457_v16  ;;  %v1455_v13 = vmov -inf  }
 0x110   : > { %v482_v20 = vpack.c.bf16 %v473_v19, %v472_v15  ;;  %1003 = vst [vmem:[%s1653_s29 + $0x8] sm:$0xff] %v1455_v13  ;;  %1004 = vst [vmem:[%s1653_s29 + $0x10] sm:$0xff] %v1455_v13  ;;  %v868_v15 = vshrl.u32 %v867_v14, 7  ;;  %v902_v16 = vand.u32 127, %v867_v14 }
 0x111   : > { %1005 = vst [vmem:[%s1653_s29 + $0x18] sm:$0xff] %v1455_v13  ;;  %1006 = vst [vmem:[%s1653_s29 + $0x20] sm:$0xff] %v1455_v13 }
 0x112   : > { %624 = vrot.lane.b32.xlu1 %v1570_v26, %s1454_s22  ;;  %1236 = vmatprep.mubr.msk.bf16.mxu1 %vm492_vm5, %v482_v20  ;;  %1007 = vst [vmem:[%s1653_s29 + $0x28] sm:$0xff] %v1455_v13  ;;  %1008 = vst [vmem:[%s1653_s29 + $0x30] sm:$0xff] %v1455_v13  ;;  %v905_v17 = vadd.s32 4294967295, %v868_v15  ;;  %vm969_vm3 = vcmp.lt.s32.totalorder %v902_v16, 8 }
 0x113   : > { %634 = vrot.lane.b32.xlu0 %v482_v20, %s1454_s22  ;;  %1009 = vst [vmem:[%s1653_s29 + $0x38] sm:$0xff] %v1455_v13  ;;  %1010 = vst [vmem:[%s1653_s29 + $0x40] sm:$0xff] %v1455_v13 }
 0x114   : > { %1237 = vmatmul.mubr.msk.bf16.gmra.mrb[12].mxu1 %vm492_vm5, %v483_v18  ;;  %1011 = vst [vmem:[%s1653_s29 + $0x48] sm:$0xff] %v1455_v13  ;;  %1012 = vst [vmem:[%s1653_s29 + $0x50] sm:$0xff] %v1455_v13  ;;  %vm921_vm2 = vcmp.le.s32.totalorder %v902_v16, %v905_v17 }
 0x115   : > { %1013 = vst [vmem:[%s1653_s29 + $0x58] sm:$0xff] %v1455_v13  ;;  %1014 = vst [vmem:[%s1653_s29 + $0x60] sm:$0xff] %v1455_v13 }
 0x116   : > { %636 = vrot.lane.b32.xlu1 %v483_v18, %s1454_s22  ;;  %1015 = vst [vmem:[%s1653_s29 + $0x68] sm:$0xff] %v1455_v13  ;;  %1016 = vst [vmem:[%s1653_s29 + $0x70] sm:$0xff] %v1455_v13 }
 0x117   : > { %1017 = vst [vmem:[%s1653_s29 + $0x78] sm:$0xff] %v1455_v13  ;;  %vm970_vm4 = vmand %vm921_vm2, %vm969_vm3 }
 0x174   : > { %v627_v11 = vpop.permute.xlu0 %626 }
 0x175   : > { %648 = vst.msk [vmem:[#allocation2 + $0x10] sm:$0xff] %vm492_vm5, %v627_v11 }
 0x178   : > { %v629_v21 = vpop.permute.xlu0 %628 }
 0x179   : > { %649 = vst.msk [vmem:[#allocation2 + $0x18] sm:$0xff] %vm492_vm5, %v629_v21 }
 0x17c   : > { %v631_v22 = vpop.permute.xlu1 %630  ;;  %v623_v23 = vpop.permute.xlu0 %622  ;;  %v703_v24 = vld [vmem:[#allocation2 + $0x10] sm:$0xff] }
 0x17d   : > { %650 = vst.msk [vmem:[#allocation2 + $0x20] sm:$0xff] %vm492_vm5, %v631_v22  ;;  %646 = vst.msk [vmem:[#allocation2] sm:$0xff] %vm492_vm5, %v623_v23  ;;  %1260 = vmatprep.mubr.msk.bf16.mxu1 %vm492_vm5, %v703_v24 }
 0x180   : > { %v633_v25 = vpop.permute.xlu1 %632  ;;  %v704_v7 = vld [vmem:[#allocation2 + $0x18] sm:$0xff] }
 0x181   : > { %651 = vst.msk [vmem:[#allocation2 + $0x28] sm:$0xff] %vm492_vm5, %v633_v25 }
 0x184   : > { %v625_v26 = vpop.permute.xlu1 %624  ;;  %v701_v27 = vld [vmem:[#allocation2] sm:$0xff] }
 0x185   : > { %647 = vst.msk [vmem:[#allocation2 + $0x8] sm:$0xff] %vm492_vm5, %v625_v26  ;;  %1256 = vmatprep.mubr.msk.bf16.mxu0 %vm492_vm5, %v701_v27  ;;  %v635_v28 = vpop.permute.xlu0 %634  ;;  %v705_v8 = vld [vmem:[#allocation2 + $0x20] sm:$0xff] }
 0x186   : > { %652 = vst.msk [vmem:[#allocation2 + $0x30] sm:$0xff] %vm492_vm5, %v635_v28 }
 0x188   : > { %v637_v29 = vpop.permute.xlu1 %636  ;;  %v706_v9 = vld [vmem:[#allocation2 + $0x28] sm:$0xff] }
 0x189   : > { %653 = vst.msk [vmem:[#allocation2 + $0x38] sm:$0xff] %vm492_vm5, %v637_v29 }
 0x18c   : > { %v702_v6 = vld [vmem:[#allocation2 + $0x8] sm:$0xff] }
 0x18d   : > { %v707_v10 = vld [vmem:[#allocation2 + $0x30] sm:$0xff] }
 0x190   : > { %v708_v12 = vld [vmem:[#allocation2 + $0x38] sm:$0xff] }
 0x1ce   : > { %v1226_v30 = vpop.f32.mrb[0].mxu1 }
 0x1cf   : > { %v551_v31 = vpop.f32.mrb[1].mxu1 }
 0x1d0   : > { %v1227_v32 = vpop.f32.mrb[2].mxu1 }
 0x1d1   : > { %v655_v33 = vpack.c.bf16 %v1227_v32, %v1226_v30  ;;  %v554_v34 = vpop.f32.mrb[3].mxu1 }
 0x1d2   : > { %v654_v35 = vpack.c.bf16 %v554_v34, %v551_v31 }
 0x1d3   : > { %663 = vst.msk [vmem:[#allocation3 + $0x8] sm:$0xff] %vm492_vm5, %v655_v33 }
 0x1d4   : > { %662 = vst.msk [vmem:[#allocation3] sm:$0xff] %vm492_vm5, %v654_v35 }
 0x1d6   : > { %v1230_v36 = vpop.f32.mrb[4].mxu1 }
 0x1d7   : > { %v567_v37 = vpop.f32.mrb[5].mxu1 }
 0x1d8   : > { %v1231_v38 = vpop.f32.mrb[6].mxu1 }
 0x1d9   : > { %v657_v39 = vpack.c.bf16 %v1231_v38, %v1230_v36  ;;  %v570_v40 = vpop.f32.mrb[7].mxu1 }
 0x1da   : > { %v656_v41 = vpack.c.bf16 %v570_v40, %v567_v37  ;;  %v714_v44 = vld [vmem:[#allocation3 + $0x8] sm:$0xff] }
 0x1db   : > { %665 = vst.msk [vmem:[#allocation3 + $0x18] sm:$0xff] %vm492_vm5, %v657_v39  ;;  %v713_v42 = vld [vmem:[#allocation3] sm:$0xff]  ;;  %v750_v51 = vsel %vm492_vm5, %v714_v44, 0 }
 0x1dc   : > { %664 = vst.msk [vmem:[#allocation3 + $0x10] sm:$0xff] %vm492_vm5, %v656_v41  ;;  %1288 = vmatprep.subr.msk.bf16.mxu0 %vm492_vm5, %v713_v42  ;;  %1289 = vmatprep.subr.msk.bf16.mxu1 %vm492_vm5, %v713_v42  ;;  %v747_v43 = vsel %vm492_vm5, %v713_v42, 0 }
 0x1dd   : > { %1241 = vmatpush3.bf16.xpose.msra.mxu0 %v747_v43  ;;  %1280 = vmatpush3.bf16.xpose.msra.mxu1 %v747_v43 }
 0x1de   : > { %1290 = vmatprep.subr.msk.bf16.mxu0 %vm492_vm5, %v714_v44  ;;  %1291 = vmatprep.subr.msk.bf16.mxu1 %vm492_vm5, %v714_v44 }
 0x1df   : > { %v1234_v45 = vpop.f32.mrb[8].mxu1 }
 0x1e0   : > { %v583_v46 = vpop.f32.mrb[9].mxu1 }
 0x1e1   : > { %v1235_v47 = vpop.f32.mrb[10].mxu1 }
 0x1e2   : > { %v659_v48 = vpack.c.bf16 %v1235_v47, %v1234_v45  ;;  %v586_v49 = vpop.f32.mrb[11].mxu1  ;;  %v716_v60 = vld [vmem:[#allocation3 + $0x18] sm:$0xff] }
 0x1e3   : > { %v658_v50 = vpack.c.bf16 %v586_v49, %v583_v46  ;;  %v715_v52 = vld [vmem:[#allocation3 + $0x10] sm:$0xff]  ;;  %v756_v61 = vsel %vm492_vm5, %v716_v60, 0 }
 0x1e4   : > { %667 = vst.msk [vmem:[#allocation3 + $0x28] sm:$0xff] %vm492_vm5, %v659_v48  ;;  %v753_v59 = vsel %vm492_vm5, %v715_v52, 0 }
 0x1e5   : > { %1243 = vmatpush3.bf16.xpose.msra.mxu0 %v750_v51  ;;  %1281 = vmatpush3.bf16.xpose.msra.mxu1 %v750_v51  ;;  %666 = vst.msk [vmem:[#allocation3 + $0x20] sm:$0xff] %vm492_vm5, %v658_v50 }
 0x1e6   : > { %1292 = vmatprep.subr.msk.bf16.mxu0 %vm492_vm5, %v715_v52  ;;  %1293 = vmatprep.subr.msk.bf16.mxu1 %vm492_vm5, %v715_v52 }
 0x1e7   : > { %v1238_v53 = vpop.f32.mrb[12].mxu1 }
 0x1e8   : > { %v599_v54 = vpop.f32.mrb[13].mxu1 }
 0x1e9   : > { %v1239_v55 = vpop.f32.mrb[14].mxu1 }
 0x1ea   : > { %v661_v56 = vpack.c.bf16 %v1239_v55, %v1238_v53  ;;  %v602_v57 = vpop.f32.mrb[15].mxu1 }
 0x1eb   : > { %v660_v58 = vpack.c.bf16 %v602_v57, %v599_v54  ;;  %v718_v0 = vld [vmem:[#allocation3 + $0x28] sm:$0xff] }
 0x1ec   : > { %669 = vst.msk [vmem:[#allocation3 + $0x38] sm:$0xff] %vm492_vm5, %v661_v56  ;;  %v717_v62 = vld [vmem:[#allocation3 + $0x20] sm:$0xff]  ;;  %v762_v1 = vsel %vm492_vm5, %v718_v0, 0 }
 0x1ed   : > { %1245 = vmatpush3.bf16.xpose.msra.mxu0 %v753_v59  ;;  %1282 = vmatpush3.bf16.xpose.msra.mxu1 %v753_v59  ;;  %668 = vst.msk [vmem:[#allocation3 + $0x30] sm:$0xff] %vm492_vm5, %v660_v58  ;;  %v759_v63 = vsel %vm492_vm5, %v717_v62, 0 }
 0x1ee   : > { %1294 = vmatprep.subr.msk.bf16.mxu0 %vm492_vm5, %v716_v60  ;;  %1295 = vmatprep.subr.msk.bf16.mxu1 %vm492_vm5, %v716_v60 }
 0x1f3   : > { %v720_v4 = vld [vmem:[#allocation3 + $0x38] sm:$0xff] }
 0x1f4   : > { %v719_v2 = vld [vmem:[#allocation3 + $0x30] sm:$0xff]  ;;  %v768_v5 = vsel %vm492_vm5, %v720_v4, 0 }
 0x1f5   : > { %1247 = vmatpush3.bf16.xpose.msra.mxu0 %v756_v61  ;;  %1283 = vmatpush3.bf16.xpose.msra.mxu1 %v756_v61  ;;  %v765_v3 = vsel %vm492_vm5, %v719_v2, 0 }
 0x1f6   : > { %1296 = vmatprep.subr.msk.bf16.mxu0 %vm492_vm5, %v717_v62  ;;  %1297 = vmatprep.subr.msk.bf16.mxu1 %vm492_vm5, %v717_v62 }
 0x1fd   : > { %1249 = vmatpush3.bf16.xpose.msra.mxu0 %v759_v63  ;;  %1284 = vmatpush3.bf16.xpose.msra.mxu1 %v759_v63 }
 0x1fe   : > { %1298 = vmatprep.subr.msk.bf16.mxu0 %vm492_vm5, %v718_v0  ;;  %1299 = vmatprep.subr.msk.bf16.mxu1 %vm492_vm5, %v718_v0 }
 0x205   : > { %1251 = vmatpush3.bf16.xpose.msra.mxu0 %v762_v1  ;;  %1285 = vmatpush3.bf16.xpose.msra.mxu1 %v762_v1 }
 0x206   : > { %1300 = vmatprep.subr.msk.bf16.mxu0 %vm492_vm5, %v719_v2  ;;  %1301 = vmatprep.subr.msk.bf16.mxu1 %vm492_vm5, %v719_v2 }
 0x20d   : > { %1253 = vmatpush3.bf16.xpose.msra.mxu0 %v765_v3  ;;  %1286 = vmatpush3.bf16.xpose.msra.mxu1 %v765_v3 }
 0x20e   : > { %1302 = vmatprep.subr.msk.bf16.mxu0 %vm492_vm5, %v720_v4  ;;  %1303 = vmatprep.subr.msk.bf16.mxu1 %vm492_vm5, %v720_v4 }
 0x215   : > { %1255 = vmatpush3.bf16.xpose.msra.mxu0 %v768_v5  ;;  %1287 = vmatpush3.bf16.xpose.msra.mxu1 %v768_v5 }
 0x21c   : > { %1257 = vmatmul.mubr.msk.bf16.vlgmr.msra.gmra.mrb[16].mxu0 %vm492_vm5, %v702_v6  ;;  %1261 = vmatmul.mubr.msk.bf16.vlgmr.msra.gmra.mrb[16].mxu1 %vm492_vm5, %v704_v7 }
 0x21d   : > { %1264 = vmatprep.mubr.msk.bf16.mxu1 %vm492_vm5, %v705_v8 }
 0x224   : > { %1265 = vmatmul.mubr.msk.bf16.gmra.mrb[20].mxu1 %vm492_vm5, %v706_v9 }
 0x225   : > { %1268 = vmatprep.mubr.msk.bf16.mxu1 %vm492_vm5, %v707_v10 }
 0x22c   : > { %1269 = vmatmul.mubr.msk.bf16.gmra.mrb[24].mxu1 %vm492_vm5, %v708_v12 }
 0x2ef   : > { %v1258_v18 = vpop.f32.mrb[16].mxu0  ;;  %v1262_v19 = vpop.f32.mrb[16].mxu1 }
 0x2f0   : > { %v804_v20 = vpop.f32.mrb[17].mxu0  ;;  %v820_v11 = vpop.f32.mrb[17].mxu1 }
 0x2f1   : > { %v986_v21 = vsel %vm970_vm4, %v804_v20, -inf  ;;  %v1259_v22 = vpop.f32.mrb[18].mxu0  ;;  %v1263_v23 = vpop.f32.mrb[18].mxu1 }
 0x2f2   : > { %1002 = vst [vmem:[%s1653_s29] sm:$0xff] %v986_v21  ;;  %v807_v24 = vpop.f32.mrb[19].mxu0  ;;  %v823_v25 = vpop.f32.mrb[19].mxu1 }
 0x2f3   : > { %1387 = shalt.err (!%p1384_p5)
}
 0x2f4   : > { %s1388_s13 = scalar_lea.hbm %s1675_s8, 2048  ;;  %s1392_s22 = scalar_lea.hbm %s1732_s4, 4096 }
 0x2f5   : > { %p1389_p6 = scmp.ne.s32.totalorder %s1675_s8, %s1388_s13  ;;  %p1393_p10 = scmp.lt.u32.totalorder %s1675_s8, %s1732_s4 }
 0x2f6   : > { %p1394_p11 = scmp.lt.u32.totalorder %s1392_s22, %s1388_s13  ;;  %p1396_p13 = scmp.lt.u32.totalorder %s1388_s13, %s1675_s8 }
 0x2f7   : > { %p1390_p7 = pnand %p1389_p6, %p1524_p4 }
 0x2f8   : > { %p1395_p12 = por %p1394_p11, %p1393_p10 }
 0x2f9   : > { %p1391_p9 = pneg %p1390_p7 }
 0x2fa   : > { %p1397_p0 = por %p1396_p13, %p1395_p12 }
 0x2fc   : > { %p1398_p1 = pnand %p1397_p0, %p1391_p9 }
 0x2fe   : > { %1401 = shalt.err (!%p1398_p1)
}
 0x2ff   : > { %s1457_s29 = smov 128   ;;  %s1458_s30 = smov 8   ;;  %v1266_v26 = vpop.f32.mrb[20].mxu1 }
 0x300   : > { %1304 = dma.vmem_to_hbm [thread:$0]  (%p1524_p4), %s1677_s5, 2048, %s1675_s8, %s1682_s18, %s1457_s29, %s1457_s29, %s1458_s30   ;;  %v836_v27 = vpop.f32.mrb[21].mxu1 }
 0x301   : > { %v1267_v28 = vpop.f32.mrb[22].mxu1 }
 0x302   : > { %v839_v29 = vpop.f32.mrb[23].mxu1 }
 0x303   : > { %v1270_v30 = vpop.f32.mrb[24].mxu1 }
 0x304   : > { %v852_v31 = vpop.f32.mrb[25].mxu1 }
 0x305   : > { %v1271_v32 = vpop.f32.mrb[26].mxu1 }
 0x306   : > { %v855_v33 = vpop.f32.mrb[27].mxu1 }
 0x307 PF: > { %p1310_p2 = scmp.ge.s32.totalorder %s1452_s20, 2  ;;  %s1050_s6 = sand.u32 1, %s1432_s15  }
 0x308   : > { %s1051_s7 = scalar_lea.sflag [#allocation5], %s1050_s6 }
 0x309   : > { %p1307_p3 = pnand %p1310_p2, %p1531_p8 }
 0x30b   : > { %1427 = dma.done.wait (!%p1307_p3), %s1051_s7, 2048  }
 0x30c   : > { %1429 = vsyncadd (!%p1307_p3), %s1051_s7, 4294965248  ;;  %s17_s20 = sadd.s32 1, %s1452_s20   ;;  %s1735_s15 = smov %s1436_s16 }
 0x30d   : > { %p14_p4 = scmp.ge.s32.totalorder %s17_s20, 4   ;;  %s1736_s16 = smov %s1440_s17 }
 0x30e   : > { %s1737_s17 = smov %s1537_s28  ;;  %s1738_s18 = smov %s1448_s19 }
 0x30f   : > { %s1739_s19 = smov %s1741_s23  ;;  %16 = sbr.rel (!%p14_p4) target bundleno = 4 (0x4), region = 85 }
 0x316   :  { %1056 = vsyncpa [#allocation5], 1 }
 0x317   :  { %1058 = vsyncpa [#allocation5 + $0x1], 1 }

</bundles_post_ra>
